<compile_context>
chip_gen: v6e
topology: v6e:2x2x1
jax: 0.10.0
libtpu: 0.0.40
codegen_flags: <defaults>
</compile_context>

<pallas_src>
import functools

import jax
import jax.numpy as jnp
import numpy as np
from jax.experimental import pallas as pl
from jax.experimental.pallas import tpu as pltpu


def _hard_trunc_kernel(*refs, epsilon, ignore_index, has_weight):
    if has_weight:
        x_ref, t_ref, w_ref, lossmap_ref, wlossmap_ref, psum_ref = refs
    else:
        x_ref, t_ref, lossmap_ref, psum_ref = refs

    # Load in native dtype, compute in f32 (v5e VPU/EUP have no bf16 support).
    x = x_ref[0].astype(jnp.float32)        # (C, tn)
    tgt = t_ref[0].astype(jnp.int32)        # (1, tn)
    C = x.shape[0]

    # log-softmax statistics without materializing lprobs (C, tn).
    m = jnp.max(x, axis=0, keepdims=True)                        # (1, tn)
    xs = x - m                                                   # (C, tn)
    lse = jnp.log(jnp.sum(jnp.exp(xs), axis=0, keepdims=True))   # (1, tn)

    cls = jax.lax.broadcasted_iota(jnp.int32, xs.shape, 0)       # (C, tn)
    x_tgt = jnp.sum(jnp.where(cls == tgt, xs, 0.0),
                    axis=0, keepdims=True)                       # xs at target class
    sum_xs = jnp.sum(xs, axis=0, keepdims=True)

    nll = lse - x_tgt            # = -lprobs[target]
    smooth = C * lse - sum_xs    # = -sum_c lprobs

    if ignore_index is not None:
        pad = tgt == ignore_index
        nll = jnp.where(pad, 0.0, nll)
        smooth = jnp.where(pad, 0.0, smooth)

    lossmap = nll * (1.0 - epsilon) + (epsilon / C) * smooth     # (1, tn) f32
    lossmap_ref[0] = lossmap

    if has_weight:
        wlossmap = lossmap * w_ref[0].astype(jnp.float32)
        wlossmap_ref[0] = wlossmap
    else:
        wlossmap = lossmap

    # Per-tile partial sum; final mean happens in the wrapper.  No shared
    # accumulator means both grid axes stay independent ("parallel").
    psum_ref[0, 0] = jnp.sum(wlossmap, axis=1, keepdims=True)    # (1, 1)


def _pick_label_dtype(C, ignore_index):
    lo, hi = 0, C - 1
    if ignore_index is not None:
        lo = min(lo, int(ignore_index))
        hi = max(hi, int(ignore_index))
    if -128 <= lo and hi <= 127:
        return jnp.int8
    if -32768 <= lo and hi <= 32767:
        return jnp.int16
    return jnp.int32


_NATIVE_SUBLANES = {4: 8, 2: 16, 1: 32}


def _pad_rows(rows, itemsize):
    n = _NATIVE_SUBLANES[itemsize]
    return ((rows + n - 1) // n) * n


def _per_step_vmem(tn, C, x_itemsize, t_itemsize, has_weight):
    b = _pad_rows(C, x_itemsize) * tn * x_itemsize    # logits tile
    b += _pad_rows(1, t_itemsize) * tn * t_itemsize   # labels tile
    b += 8 * tn * 4                                   # lossmap tile
    if has_weight:
        b += 2 * 8 * tn * 4                           # weight + wlossmap tiles
    return b + 8 * 128 * 4                            # padded partial-sum tile


def _pick_tile(N, C, x_itemsize, t_itemsize, has_weight, target_bytes=6 << 20):
    """Largest 128-multiple divisor of N with a ~few-MiB per-step footprint."""
    best = 128
    t = 128
    while (t <= N and
           _per_step_vmem(t, C, x_itemsize, t_itemsize, has_weight) <= target_bytes):
        if N % t == 0:
            best = t
        t += 128
    return best


def hard_trunc_loss(x, target, weight=None, *, smooth_factor=0.05,
                    ignore_index=None, tile_n=None):
    """Pallas implementation of HardTruncLoss / weighted_label_smoothed_nll_loss.

    x:      [B, C, H, W] logits (any float dtype; bf16 recommended for bandwidth)
    target: [B, H, W] int labels
    weight: [B, H, W] float weight map or None
    Returns (loss_scalar, lossmap [B,H,W], wlossmap [B,H,W]).
    """
    B, C, H, W = x.shape
    N = H * W
    assert N % 128 == 0, "H*W must be a multiple of 128 (TPU lane width)"
    # TODO(synk): non-128-multiple spatial sizes would need padding + masking.

    x3 = x.reshape(B, C, N)                              # keep native dtype in HBM
    t_dtype = _pick_label_dtype(C, ignore_index)
    t3 = target.reshape(B, 1, N).astype(t_dtype)         # shrink label stream
    has_weight = weight is not None

    x_b = jnp.dtype(x3.dtype).itemsize
    t_b = jnp.dtype(t_dtype).itemsize

    if tile_n is None:
        tn = _pick_tile(N, C, x_b, t_b, has_weight)
    else:
        tn = int(tile_n)
        assert tn % 128 == 0 and N % tn == 0, "tile_n must be a 128-multiple divisor of H*W"
    nt = N // tn
    grid = (B, nt)

    per_step = _per_step_vmem(tn, C, x_b, t_b, has_weight)
    vmem_limit = int(min(64 << 20, max(16 << 20, 3 * per_step)))

    args = [x3, t3]
    in_specs = [
        pl.BlockSpec((1, C, tn), lambda b, n: (b, 0, n)),
        pl.BlockSpec((1, 1, tn), lambda b, n: (b, 0, n)),
    ]
    if has_weight:
        args.append(weight.reshape(B, 1, N))
        in_specs.append(pl.BlockSpec((1, 1, tn), lambda b, n: (b, 0, n)))

    out_shape = [jax.ShapeDtypeStruct((B, 1, N), jnp.float32)]           # lossmap
    out_specs = [pl.BlockSpec((1, 1, tn), lambda b, n: (b, 0, n))]
    if has_weight:
        out_shape.append(jax.ShapeDtypeStruct((B, 1, N), jnp.float32))   # wlossmap
        out_specs.append(pl.BlockSpec((1, 1, tn), lambda b, n: (b, 0, n)))
    out_shape.append(jax.ShapeDtypeStruct((B, nt, 1, 1), jnp.float32))   # partial sums
    out_specs.append(pl.BlockSpec((1, 1, 1, 1), lambda b, n: (b, n, 0, 0)))

    kernel = functools.partial(
        _hard_trunc_kernel,
        epsilon=float(smooth_factor),
        ignore_index=ignore_index,
        has_weight=has_weight,
    )

    outs = pl.pallas_call(
        kernel,
        out_shape=tuple(out_shape),
        grid_spec=pltpu.PrefetchScalarGridSpec(
            num_scalar_prefetch=0,
            grid=grid,
            in_specs=in_specs,
            out_specs=out_specs,
        ),
        compiler_params=pltpu.CompilerParams(
            dimension_semantics=("parallel", "parallel"),
            vmem_limit_bytes=vmem_limit),
    )(*args)

    if has_weight:
        lossmap, wlossmap, psum = outs
    else:
        lossmap, psum = outs
        wlossmap = lossmap

    # reduction='mean' in the torch code is a plain wlossmap.mean() -> divide by B*N.
    loss = jnp.sum(psum) * (1.0 / float(B * N))
    return loss, lossmap.reshape(B, H, W), wlossmap.reshape(B, H, W)


def _reference(x, target, weight, epsilon, ignore_index=None):
    # pure-JAX reference mirroring the PyTorch function
    lprobs = jax.nn.log_softmax(x.astype(jnp.float32), axis=1)           # [B,C,H,W]
    C = x.shape[1]
    tgt = jnp.clip(target.astype(jnp.int32), 0, C - 1)
    nll = -jnp.take_along_axis(lprobs, tgt[:, None], axis=1)[:, 0]       # [B,H,W]
    smooth = -jnp.sum(lprobs, axis=1)                                    # [B,H,W]
    if ignore_index is not None:
        pad = target == ignore_index
        nll = jnp.where(pad, 0.0, nll)
        smooth = jnp.where(pad, 0.0, smooth)
    lossmap = nll * (1.0 - epsilon) + (epsilon / C) * smooth
    wlossmap = lossmap * weight if weight is not None else lossmap
    return jnp.mean(wlossmap), lossmap, wlossmap


if __name__ == "__main__":
    key = jax.random.PRNGKey(0)
    k1, k2, k3 = jax.random.split(key, 3)

    B, C, H, W = 2, 4, 16, 16
    x = jax.random.normal(k1, (B, C, H, W), jnp.float32)
    target = jax.random.randint(k2, (B, H, W), 0, C, jnp.int32)
    weight = jax.random.uniform(k3, (B, H, W), jnp.float32, 0.5, 1.5)

    # Variant 1: f32 logits + weight map, no ignore_index.
    loss, lossmap, wlossmap = hard_trunc_loss(
        x, target, weight, smooth_factor=0.05, ignore_index=None)
    jax.block_until_ready((loss, lossmap, wlossmap))
    ref_loss, ref_lm, ref_wlm = _reference(x, target, weight, 0.05, None)
    np.testing.assert_allclose(np.asarray(loss), np.asarray(ref_loss),
                               rtol=1e-5, atol=1e-5)
    np.testing.assert_allclose(np.asarray(lossmap), np.asarray(ref_lm),
                               rtol=1e-5, atol=1e-5)
    np.testing.assert_allclose(np.asarray(wlossmap), np.asarray(ref_wlm),
                               rtol=1e-5, atol=1e-5)

    # Variant 2: bf16 logits, no weight map, ignore_index set
    # (exercises the narrow-label / no-weight kernel specialization).
    xb = x.astype(jnp.bfloat16)
    loss2, lm2, wlm2 = hard_trunc_loss(
        xb, target, None, smooth_factor=0.1, ignore_index=3)
    jax.block_until_ready((loss2, lm2, wlm2))
    ref_loss2, ref_lm2, ref_wlm2 = _reference(xb, target, None, 0.1, 3)
    np.testing.assert_allclose(np.asarray(loss2), np.asarray(ref_loss2),
                               rtol=1e-4, atol=1e-4)
    np.testing.assert_allclose(np.asarray(lm2), np.asarray(ref_lm2),
                               rtol=1e-4, atol=1e-4)
    np.testing.assert_allclose(np.asarray(wlm2), np.asarray(ref_wlm2),
                               rtol=1e-4, atol=1e-4)

    print("KERNEL_OK")
</pallas_src>

<mosaic_0001>
module attributes {stable_mosaic.version = 11 : i64} {
  func.func @_hard_trunc_kernel(%arg0: i32, %arg1: i32, %arg2: memref<1x4x256xf32, #tpu.memory_space<vmem>>, %arg3: memref<1x1x256xi8, #tpu.memory_space<vmem>>, %arg4: memref<1x1x256xf32, #tpu.memory_space<vmem>>, %arg5: memref<1x1x256xf32, #tpu.memory_space<vmem>>, %arg6: memref<1x1x256xf32, #tpu.memory_space<vmem>>, %arg7: memref<1x1x1x1xf32, #tpu.memory_space<vmem>>) attributes {dimension_semantics = [#tpu.dimension_semantics<parallel>, #tpu.dimension_semantics<parallel>], iteration_bounds = array<i64: 2, 1>, scalar_prefetch = 0 : i64, scratch_operands = 0 : i64, tpu.core_type = #tpu.core_type<tc>, window_params = [{transform_indices = @transform_0, window_bounds = array<i64: 1, 4, 256>}, {transform_indices = @transform_1, window_bounds = array<i64: 1, 1, 256>}, {transform_indices = @transform_2, window_bounds = array<i64: 1, 1, 256>}, {transform_indices = @transform_3, window_bounds = array<i64: 1, 1, 256>}, {transform_indices = @transform_4, window_bounds = array<i64: 1, 1, 256>}, {transform_indices = @transform_5, window_bounds = array<i64: 1, 1, 1, 1>}]} {
    %c0 = arith.constant 0 : index
    %c0_0 = arith.constant 0 : index
    %c0_1 = arith.constant 0 : index
    %0 = vector.load %arg2[%c0, %c0_0, %c0_1] : memref<1x4x256xf32, #tpu.memory_space<vmem>>, vector<1x4x256xf32>
    %1 = vector.shape_cast %0 : vector<1x4x256xf32> to vector<4x256xf32>
    %c0_2 = arith.constant 0 : index
    %c0_3 = arith.constant 0 : index
    %c0_4 = arith.constant 0 : index
    %2 = vector.load %arg3[%c0_2, %c0_3, %c0_4] : memref<1x1x256xi8, #tpu.memory_space<vmem>>, vector<1x1x256xi8>
    %3 = vector.shape_cast %2 : vector<1x1x256xi8> to vector<1x256xi8>
    %4 = arith.extsi %3 : vector<1x256xi8> to vector<1x256xi32>
    %cst = arith.constant dense<0xFF800000> : vector<256xf32>
    %5 = vector.multi_reduction <maximumf>, %1, %cst [0] : vector<4x256xf32> to vector<256xf32>
    %6 = vector.shape_cast %5 : vector<256xf32> to vector<1x256xf32>
    %7 = vector.broadcast %6 : vector<1x256xf32> to vector<4x256xf32>
    %8 = arith.subf %1, %7 : vector<4x256xf32>
    %9 = math.exp %8 : vector<4x256xf32>
    %cst_5 = arith.constant dense<0.000000e+00> : vector<256xf32>
    %10 = vector.multi_reduction <add>, %9, %cst_5 [0] : vector<4x256xf32> to vector<256xf32>
    %11 = vector.shape_cast %10 : vector<256xf32> to vector<1x256xf32>
    %12 = math.log %11 : vector<1x256xf32>
    %13 = tpu.iota {dimensions = array<i32: 0>} : vector<4x256xi32>
    %14 = vector.broadcast %4 : vector<1x256xi32> to vector<4x256xi32>
    %15 = arith.cmpi eq, %13, %14 : vector<4x256xi32>
    %cst_6 = arith.constant 0.000000e+00 : f32
    %16 = vector.broadcast %cst_6 : f32 to vector<4x256xf32>
    %17 = arith.select %15, %8, %16 : vector<4x256xi1>, vector<4x256xf32>
    %cst_7 = arith.constant dense<0.000000e+00> : vector<256xf32>
    %18 = vector.multi_reduction <add>, %17, %cst_7 [0] : vector<4x256xf32> to vector<256xf32>
    %19 = vector.shape_cast %18 : vector<256xf32> to vector<1x256xf32>
    %cst_8 = arith.constant dense<0.000000e+00> : vector<256xf32>
    %20 = vector.multi_reduction <add>, %8, %cst_8 [0] : vector<4x256xf32> to vector<256xf32>
    %21 = vector.shape_cast %20 : vector<256xf32> to vector<1x256xf32>
    %22 = arith.subf %12, %19 : vector<1x256xf32>
    %cst_9 = arith.constant 4.000000e+00 : f32
    %23 = vector.broadcast %cst_9 : f32 to vector<1x256xf32>
    %24 = arith.mulf %23, %12 : vector<1x256xf32>
    %25 = arith.subf %24, %21 : vector<1x256xf32>
    %cst_10 = arith.constant 0.949999988 : f32
    %26 = vector.broadcast %cst_10 : f32 to vector<1x256xf32>
    %27 = arith.mulf %22, %26 : vector<1x256xf32>
    %cst_11 = arith.constant 1.250000e-02 : f32
    %28 = vector.broadcast %cst_11 : f32 to vector<1x256xf32>
    %29 = arith.mulf %28, %25 : vector<1x256xf32>
    %30 = arith.addf %27, %29 : vector<1x256xf32>
    %c0_12 = arith.constant 0 : index
    %c0_13 = arith.constant 0 : index
    %c0_14 = arith.constant 0 : index
    %31 = vector.load %arg5[%c0_12, %c0_13, %c0_14] : memref<1x1x256xf32, #tpu.memory_space<vmem>>, vector<1x1x256xf32>
    %32 = vector.shape_cast %31 : vector<1x1x256xf32> to vector<1x256xf32>
    %33 = vector.shape_cast %30 : vector<1x256xf32> to vector<1x1x256xf32>
    tpu.vector_store %arg5[%c0_12, %c0_13, %c0_14], %33 {strides = array<i32>} : memref<1x1x256xf32, #tpu.memory_space<vmem>>, vector<1x1x256xf32>,
    %c0_15 = arith.constant 0 : index
    %c0_16 = arith.constant 0 : index
    %c0_17 = arith.constant 0 : index
    %34 = vector.load %arg4[%c0_15, %c0_16, %c0_17] : memref<1x1x256xf32, #tpu.memory_space<vmem>>, vector<1x1x256xf32>
    %35 = vector.shape_cast %34 : vector<1x1x256xf32> to vector<1x256xf32>
    %36 = arith.mulf %30, %35 : vector<1x256xf32>
    %c0_18 = arith.constant 0 : index
    %c0_19 = arith.constant 0 : index
    %c0_20 = arith.constant 0 : index
    %37 = vector.load %arg6[%c0_18, %c0_19, %c0_20] : memref<1x1x256xf32, #tpu.memory_space<vmem>>, vector<1x1x256xf32>
    %38 = vector.shape_cast %37 : vector<1x1x256xf32> to vector<1x256xf32>
    %39 = vector.shape_cast %36 : vector<1x256xf32> to vector<1x1x256xf32>
    tpu.vector_store %arg6[%c0_18, %c0_19, %c0_20], %39 {strides = array<i32>} : memref<1x1x256xf32, #tpu.memory_space<vmem>>, vector<1x1x256xf32>,
    %cst_21 = arith.constant dense<0.000000e+00> : vector<1xf32>
    %40 = vector.multi_reduction <add>, %36, %cst_21 [1] : vector<1x256xf32> to vector<1xf32>
    %41 = vector.shape_cast %40 : vector<1xf32> to vector<1x1xf32>
    %c0_22 = arith.constant 0 : index
    %c0_23 = arith.constant 0 : index
    %c0_24 = arith.constant 0 : index
    %c0_25 = arith.constant 0 : index
    %42 = vector.load %arg7[%c0_22, %c0_23, %c0_24, %c0_25] : memref<1x1x1x1xf32, #tpu.memory_space<vmem>>, vector<1x1x1x1xf32>
    %43 = vector.shape_cast %42 : vector<1x1x1x1xf32> to vector<1x1xf32>
    %44 = vector.shape_cast %41 : vector<1x1xf32> to vector<1x1x1x1xf32>
    tpu.vector_store %arg7[%c0_22, %c0_23, %c0_24, %c0_25], %44 {strides = array<i32>} : memref<1x1x1x1xf32, #tpu.memory_space<vmem>>, vector<1x1x1x1xf32>,
    return
  }
  func.func @transform_0(%arg0: i32, %arg1: i32) -> (i32, i32, i32) {
    %c0_i32 = arith.constant 0 : i32
    %c0_i32_0 = arith.constant 0 : i32
    return %arg0, %c0_i32, %arg1 : i32, i32, i32
  }
  func.func @transform_1(%arg0: i32, %arg1: i32) -> (i32, i32, i32) {
    %c0_i32 = arith.constant 0 : i32
    %c0_i32_0 = arith.constant 0 : i32
    return %arg0, %c0_i32, %arg1 : i32, i32, i32
  }
  func.func @transform_2(%arg0: i32, %arg1: i32) -> (i32, i32, i32) {
    %c0_i32 = arith.constant 0 : i32
    %c0_i32_0 = arith.constant 0 : i32
    return %arg0, %c0_i32, %arg1 : i32, i32, i32
  }
  func.func @transform_3(%arg0: i32, %arg1: i32) -> (i32, i32, i32) {
    %c0_i32 = arith.constant 0 : i32
    %c0_i32_0 = arith.constant 0 : i32
    return %arg0, %c0_i32, %arg1 : i32, i32, i32
  }
  func.func @transform_4(%arg0: i32, %arg1: i32) -> (i32, i32, i32) {
    %c0_i32 = arith.constant 0 : i32
    %c0_i32_0 = arith.constant 0 : i32
    return %arg0, %c0_i32, %arg1 : i32, i32, i32
  }
  func.func @transform_5(%arg0: i32, %arg1: i32) -> (i32, i32, i32, i32) {
    %c0_i32 = arith.constant 0 : i32
    %c0_i32_0 = arith.constant 0 : i32
    %c0_i32_1 = arith.constant 0 : i32
    return %arg0, %arg1, %c0_i32, %c0_i32_0 : i32, i32, i32, i32
  }
}

</mosaic_0001>

<bundles_post_ra>
// kernel: tpu_custom_call.1
= control target key start
LH: loop header
LB: loop body
LE: loop exit
PB: predicated region body
PF: predicated region fallthrough
CT: control target
= control target key end

     0   :  { %s1238_s0 = inlined_call_operand.hbm [shape: f32[2,4,256], index: 0, kind: input, shape index: {}]   ;;  %s1239_s1 = inlined_call_operand.vmem [shape: s8[2,1,256], index: 1, kind: input, shape index: {}]   ;;  %s1240_s2 = inlined_call_operand.vmem [shape: f32[2,1,256], index: 2, kind: input, shape index: {}]   ;;  %s1241_s3 = inlined_call_operand.hbm [shape: f32[2,1,256], index: 3, kind: output, shape index: {0}]   ;;  %s1242_s4 = inlined_call_operand.hbm [shape: f32[2,1,256], index: 4, kind: output, shape index: {1}]   ;;  %s1243_s5 = inlined_call_operand.vmem [shape: f32[2,1,1,1], index: 5, kind: output, shape index: {2}]  }
   0x1   :  { %1245 = sst [smem:[#allocation11_spill]] %s1238_s0 }
   0x2   :  { %11 = vsyncpa [#allocation3], 0 }
   0x3   :  { %13 = vsyncpa [#allocation3 + $0x1], 0 }
   0x4   :  { %14 = vsyncpa [#allocation4], 0 }
   0x5   :  { %16 = vsyncpa [#allocation4 + $0x1], 0 }
   0x6   :  { %17 = vsyncpa [#allocation7], 0 }
   0x7   :  { %19 = vsyncpa [#allocation7 + $0x1], 0  ;;  %s1030_s18 = smov 0   ;;  %s1032_s19 = smov 0  }
   0x8   :  { %s1034_s20 = smov 0   ;;  %s1036_s21 = smov 0  }
   0x9   :  { %s1038_s22 = smov 0   ;;  %s1040_s23 = smov 0  }
   0xa LB: > { %s757_s24 = sadd.s32 4294967295, %s994_s23   ;;  %s758_s25 = sadd.s32 4294967294, %s994_s23   ;;  %s994_s23 = sphi %s1040_s23, %s25_s23   ;;  %s990_s22 = sphi %s1038_s22, %s1259_s22   ;;  %s986_s21 = sphi %s1036_s21, %s1258_s21   ;;  %s982_s20 = sphi %s1034_s20, %s1257_s20   ;;  %s978_s19 = sphi %s1032_s19, %s1256_s19   ;;  %s974_s18 = sphi %s1030_s18, %s1255_s18  }
   0xb   : > { %s37_s26 = sadd.s32 1, %s990_s22  ;;  %s46_s27 = sadd.s32 1, %s982_s20 }
   0xc   : > { %p39_p0 = scmp.ge.s32.totalorder %s37_s26, 2  ;;  %p53_p1 = scmp.ne.s32.totalorder %s982_s20, %s978_s19 }
   0xd   : > { %p54_p2 = scmp.eq.s32.totalorder %s994_s23, 0  ;;  %p59_p3 = scmp.ne.s32.totalorder %s978_s19, %s974_s18 }
   0xe   : > { %s1261_s26 = smov (%p39_p0, %s37_s26), 0  ;;  %p60_p5 = scmp.eq.s32.totalorder %s757_s24, 0 }
   0xf   : > { %p1071_p4 = por %p54_p2, %p53_p1  ;;  %s41_s29 = ssub.s32 %s990_s22, %s1261_s26 }
  0x10   : > { %p141_p6 = scmp.eq.s32.totalorder %s757_s24, 1  ;;  %p44_p7 = scmp.eq.s32.totalorder %s41_s29, 0 }
  0x11   : > { %p1077_p8 = por %p60_p5, %p59_p3  ;;  %p147_p10 = scmp.eq.s32.totalorder %s758_s25, 1 }
  0x12   : > { %p1081_p9 = por %p141_p6, %p53_p1  ;;  %p798_p13 = scmp.lt.s32.totalorder %s994_s23, 2 }
  0x13   : > { %s1086_s7 = scalar_select %p44_p7, %s982_s20, %s46_s27  }
  0x14   : > { %p1088_p11 = por %p147_p10, %p59_p3  ;;  %s223_s9 = sand.u32 1, %s982_s20  }
  0x15   : > { %s761_s10 = sshll.u32 %s223_s9, 3  ;;  %s778_s11 = sshll.u32 %s990_s22, 7 }
  0x16   : > { %s1249_s8 = scalar_select %p1088_p11, 1, 0 }
  0x17   : > { %s1250_s0 = sld [smem:[#allocation11_spill]]  ;;  %s227_s15 = scalar_lea.vmem [#allocation2], %s761_s10 }
  0x18   : > { %s237_s16 = sshll.u32 %s227_s15, 4  ;;  %p1101_p0 = pnand %p798_p13, %p1071_p4  ;;  %s238_s16 = int_to_ptr.vmem [resolvable:$true] %s237_s16 }
  0x19   : > { %p764_p1 = scmp.ge.s32.totalorder %s994_s23, 1  ;;  %p266_p2 = scmp.lt.s32.totalorder %s994_s23, 3 }
  0x1a   : > { %s224_s24 = scalar_lea.sflag [#allocation3], %s223_s9  ;;  %p858_p3 = pneg %p1101_p0 }
  0x1b   : > { %s869_s25 = scalar_lea.vmem %s238_s16, 128  ;;  %s996_s27 = smov [#allocation2]  }
  0x1c   : > { %p870_p5 = scmp.ne.s32.totalorder %s238_s16, %s869_s25  ;;  %s874_s29 = sshll.u32 %s996_s27, 4  ;;  %s875_s29 = int_to_ptr.vmem [resolvable:$false] %s874_s29 }
  0x1d   : > { %s235_s14 = scalar_lea.hbm %s1250_s0, %s778_s11  ;;  %s876_s10 = scalar_lea.vmem %s875_s29, 256 }
  0x1e   : > { %p872_p6 = pnand %p870_p5, %p858_p3  ;;  %p877_p10 = scmp.lt.s32.totalorder %s238_s16, %s875_s29 }
  0x1f   : > { %p878_p12 = scmp.lt.s32.totalorder %s876_s10, %s869_s25 }
  0x20   : > { %p873_p7 = pneg %p872_p6 }
  0x21   : > { %p879_p4 = por %p878_p12, %p877_p10 }
  0x23   : > { %p880_p13 = pnand %p879_p4, %p873_p7 }
  0x25   : > { %883 = shalt.err (!%p880_p13)
}
  0x26   : > { %790 = dma.hbm_to_vmem [thread:$0]  (!%p1101_p0), %s235_s14, 128, %s238_s16, %s224_s24  }
  0x27   : > { %p267_p11 = pnand %p764_p1, %p266_p2 }
  0x28   : > { %s1116_s28 = sand.u32 (!%p267_p11), 1, %s978_s19  }
  0x29   : > { %270 = sbr.rel (%p267_p11) target bundleno = 266 (0x10a), region = 32  ;;  %s765_s9 = sshll.u32 (!%p267_p11), %s1116_s28, 3 }
  0x2a   : > { %s273_s11 = scalar_lea.sflag (!%p267_p11), [#allocation3], %s1116_s28  ;;  %s276_s12 = scalar_lea.vmem (!%p267_p11), [#allocation2], %s765_s9 }
  0x2e   : > { %961 = dma.done.wait (%p1077_p8), %s273_s11, 128  }
  0x2f   : > { %963 = vsyncadd (%p1077_p8), %s273_s11, 4294967168  ;;  %vm363_vm0 = vcmask 1043456   ;;  %v357_v0 = vld [vmem:[%s276_s12] sm:$0xff]  ;;  %p332_p11 = scmp.lt.s32.totalorder %s986_s21, 1  ;;  %v406_v15 = vlaneseq  ;;  %vm527_vm3 = vcmask 1040384   ;;  %s766_s27 = sshll.u32 %s1116_s28, 1 }
  0x30   : > { %v361_v1 = vcombine.high %v357_v0, %v357_v0  ;;  %v364_v2 = vsel %vm363_vm0, %v357_v0, -inf  ;;  %s1244_s29 = sshll.u32 %s986_s21, 5  ;;  %s314_s10 = scalar_lea.vmem [#allocation5], %s766_s27 }
  0x31   : > { %v365_v3 = vrot.slane %v364_v2, 4  ;;  %s1128_s13 = scalar_select %p332_p11, %s986_s21, 1  ;;  %v1137_v18 = vshrl.u32 %v406_v15, 7  ;;  %vm491_vm4 = vcmp.lt.s32.totalorder %v406_v15, 256 }
  0x32   : > { %v371_v4 = vsel %vm363_vm0, %v361_v1, -inf  ;;  %s563_s9 = sshll.u32 %s314_s10, 4  ;;  %s1172_s14 = scalar_lea.vmem [#allocation6], %s766_s27  ;;  %s564_s9 = int_to_ptr.vmem [resolvable:$true] %s563_s9 }
  0x33   : > { %v366_v5 = vmax.f32 %v364_v2, %v365_v3  ;;  %v372_v6 = vrot.slane %v371_v4, 4  ;;  %s768_s30 = sshll.u32 %s1128_s13, 1  ;;  %v1140_v23 = vsub.s32 0, %v1137_v18  ;;  %v414_v24 = vsub.s32 4, %v1137_v18  ;;  %s536_s15 = scalar_lea.sflag [#allocation4], %s1116_s28 }
  0x34   : > { %s338_s16 = scalar_lea.vmem %s1239_s1, %s768_s30  ;;  %s347_s25 = scalar_lea.vmem %s1240_s2, %s768_s30 }
  0x35   : > { %v367_v7 = vrot.slane %v366_v5, 2  ;;  %v373_v8 = vmax.f32 %v371_v4, %v372_v6  ;;  %v358_v19 = vld [vmem:[%s338_s16] sm:$0x3]  ;;  %s1170_s30 = scalar_lea.hbm %s1241_s3, %s1244_s29  ;;  %s884_s16 = scalar_lea.vmem %s564_s9, 32 }
  0x36   : > { %v359_v21 = vunpack.c.0.s8 %v358_v19  ;;  %p885_p8 = scmp.ne.s32.totalorder %s564_s9, %s884_s16  ;;  %s998_s17 = smov [#allocation5]  }
  0x37   : > { %v368_v9 = vmax.f32 %v366_v5, %v367_v7  ;;  %v374_v10 = vrot.slane %v373_v8, 2  ;;  %s888_s24 = sshll.u32 %s998_s17, 4  ;;  %s889_s24 = int_to_ptr.vmem [resolvable:$false] %s888_s24 }
  0x38   : > { %v411_v25 = vrot.slane %v359_v21, %v1140_v23  ;;  %v415_v26 = vrot.slane %v359_v21, %v414_v24  ;;  %v502_v21 = vsub.s32 1, %v1137_v18  ;;  %p886_p12 = pnand %p885_p8, %p1081_p9  ;;  %p891_p1 = scmp.lt.s32.totalorder %s564_s9, %s889_s24 }
  0x39   : > { %v369_v11 = vrot.slane %v368_v9, 1  ;;  %v375_v12 = vmax.f32 %v373_v8, %v374_v10 }
  0x3a   : > { %v419_v27 = vrot.slane %v411_v25, %v1140_v23  ;;  %v423_v28 = vrot.slane %v415_v26, %v1140_v23  ;;  %p887_p0 = pneg %p886_p12 }
  0x3b   : > { %v370_v13 = vmax.f32 %v368_v9, %v369_v11  ;;  %v376_v14 = vrot.slane %v375_v12, 1 }
  0x3c   : > { %vm424_vm1 = vcmp.eq.s32.totalorder %v1137_v18, %v419_v27  ;;  %vm425_vm2 = vcmp.eq.s32.totalorder %v1137_v18, %v423_v28  ;;  %v997_v27 = vmov 1966171168  }
  0x3d   : > { %v377_v16 = vmax.f32 %v375_v12, %v376_v14  ;;  %v475_v28 = vunpack.c.l.s4 %v997_v27 }
  0x3f   : > { %v380_v17 = vcombine.low %v370_v13, %v377_v16 }
  0x41   : > { %v382_v20 = vsub.f32 %v357_v0, %v380_v17 }
  0x43   : > { %v383_v22 = vmul.f32 1.442695, %v382_v20  ;;  %v427_v29 = vcombine.high %v382_v20, %v382_v20  ;;  %v429_v31 = vsel %vm424_vm1, %v382_v20, 0.0  ;;  %v445_v41 = vsel %vm363_vm0, %v382_v20, 0.0  ;;  %v494_v20 = vld [vmem:[%s347_s25] sm:$0x3] }
  0x44   : > { %v431_v37 = vsel %vm363_vm0, %v429_v31, 0.0  ;;  %v446_v49 = vrot.slane %v445_v41, 4  ;;  %s890_s25 = scalar_lea.vmem %s889_s24, 64 }
  0x45   : > { %850 = vpow2.f32 %v383_v22  ;;  %v430_v35 = vsel %vm425_vm2, %v427_v29, 0.0  ;;  %v432_v44 = vrot.slane %v431_v37, 4  ;;  %v452_v45 = vsel %vm363_vm0, %v427_v29, 0.0  ;;  %p892_p2 = scmp.lt.s32.totalorder %s890_s25, %s884_s16 }
  0x46   : > { %v438_v40 = vsel %vm363_vm0, %v430_v35, 0.0  ;;  %v453_v53 = vrot.slane %v452_v45, 4  ;;  %v447_v57 = vadd.f32 %v446_v49, %v445_v41  ;;  %v503_v35 = vrot.slane %v494_v20, %v502_v21 }
  0x47   : > { %v439_v48 = vrot.slane %v438_v40, 4  ;;  %v433_v52 = vadd.f32 %v432_v44, %v431_v37  ;;  %v476_v37 = vunpack.c.0.s8 %v475_v28  ;;  %p893_p3 = por %p892_p2, %p891_p1 }
  0x48   : > { %v454_v60 = vadd.f32 %v453_v53, %v452_v45  ;;  %v448_v62 = vrot.slane %v447_v57, 2 }
  0x49   : > { %v440_v56 = vadd.f32 %v439_v48, %v438_v40  ;;  %v434_v59 = vrot.slane %v433_v52, 2  ;;  %p894_p5 = pnand %p893_p3, %p887_p0 }
  0x4a   : > { %v455_v0 = vrot.slane %v454_v60, 2  ;;  %v449_v2 = vadd.f32 %v448_v62, %v447_v57 }
  0x4b   : > { %v441_v61 = vrot.slane %v440_v56, 2  ;;  %v435_v63 = vadd.f32 %v434_v59, %v433_v52 }
  0x4c   : > { %v456_v4 = vadd.f32 %v455_v0, %v454_v60  ;;  %v450_v6 = vrot.slane %v449_v2, 1 }
  0x4d   : > { %v442_v1 = vadd.f32 %v441_v61, %v440_v56  ;;  %v436_v3 = vrot.slane %v435_v63, 1 }
  0x4e   : > { %v457_v8 = vrot.slane %v456_v4, 1  ;;  %v451_v12 = vadd.f32 %v450_v6, %v449_v2 }
  0x4f   : > { %v443_v5 = vrot.slane %v442_v1, 1  ;;  %v437_v7 = vadd.f32 %v436_v3, %v435_v63 }
  0x50   : > { %v458_v16 = vadd.f32 %v457_v8, %v456_v4 }
  0x51   : > { %v444_v11 = vadd.f32 %v443_v5, %v442_v1 }
  0x52   : > { %v851_v30 = vpop.eup %850 }
  0x53   : > { %v386_v32 = vcombine.high %v851_v30, %v851_v30  ;;  %v388_v33 = vsel %vm363_vm0, %v851_v30, 0.0 }
  0x54   : > { %v389_v34 = vrot.slane %v388_v33, 4 }
  0x55   : > { %v395_v36 = vsel %vm363_vm0, %v386_v32, 0.0  ;;  %v499_v32 = vrot.slane %v494_v20, %v1140_v23 }
  0x56   : > { %v390_v38 = vadd.f32 %v389_v34, %v388_v33  ;;  %v396_v39 = vrot.slane %v395_v36, 4 }
  0x58   : > { %v391_v42 = vrot.slane %v390_v38, 2  ;;  %v397_v43 = vadd.f32 %v396_v39, %v395_v36 }
  0x5a   : > { %v392_v46 = vadd.f32 %v391_v42, %v390_v38  ;;  %v398_v47 = vrot.slane %v397_v43, 2  ;;  %v479_v42 = vsub.s32 %v476_v37, %v1137_v18 }
  0x5c   : > { %v393_v50 = vrot.slane %v392_v46, 1  ;;  %v399_v51 = vadd.f32 %v398_v47, %v397_v43 }
  0x5e   : > { %v394_v54 = vadd.f32 %v393_v50, %v392_v46  ;;  %v400_v55 = vrot.slane %v399_v51, 1 }
  0x60   : > { %v401_v58 = vadd.f32 %v400_v55, %v399_v51  ;;  %852 = vlog2.f32 %v394_v54 }
  0x62   : > { %854 = vlog2.f32 %v401_v58 }
  0x6d   : > { %v853_v9 = vpop.eup %852 }
  0x6e   : > { %v403_v10 = vmul.f32 0.6931472, %v853_v9 }
  0x6f   : > { %v855_v13 = vpop.eup %854 }
  0x70   : > { %v405_v14 = vmul.f32 0.6931472, %v855_v13  ;;  %v459_v17 = vsub.f32 %v403_v10, %v437_v7  ;;  %v461_v19 = vmul.f32 4.0, %v403_v10 }
  0x72   : > { %v460_v22 = vsub.f32 %v405_v14, %v444_v11  ;;  %v462_v24 = vmul.f32 4.0, %v405_v14  ;;  %v463_v25 = vsub.f32 %v461_v19, %v451_v12  ;;  %v465_v26 = vmul.f32 0.95, %v459_v17 }
  0x74   : > { %v464_v29 = vsub.f32 %v462_v24, %v458_v16  ;;  %v466_v30 = vmul.f32 0.95, %v460_v22  ;;  %v467_v31 = vmul.f32 0.0125, %v463_v25 }
  0x76   : > { %v468_v33 = vmul.f32 0.0125, %v464_v29  ;;  %v469_v34 = vadd.f32 %v467_v31, %v465_v26 }
  0x78   : > { %v470_v36 = vadd.f32 %v468_v33, %v466_v30  ;;  %v506_v38 = vmul.f32 %v499_v32, %v469_v34 }
  0x7a   : > { %v507_v39 = vmul.f32 %v503_v35, %v470_v36  ;;  %v528_v40 = vsel %vm527_vm3, %v506_v38, 0.0  ;;  %v473_v41 = vcombine.low %v469_v34, %v470_v36 }
  0x7c   : > { %v510_v43 = vcombine.low %v506_v38, %v507_v39  ;;  %v529_v44 = vsel %vm527_vm3, %v507_v39, 0.0  ;;  %v480_v23 = vrot.slane %v473_v41, %v479_v42 }
  0x7d   : > { %v530_v45 = vadd.f32 %v529_v44, %v528_v40 }
  0x7e   : > { %v517_v46 = vrot.slane %v510_v43, %v479_v42  ;;  %v487_v47 = vrot.slane %v480_v23, %v479_v42 }
  0x7f   : > { %531 = vadd.xlane.f32.xlu0 %v530_v45 }
  0x80   : > { %v524_v48 = vrot.slane %v517_v46, %v479_v42  ;;  %493 = vst.msk [vmem:[%s314_s10] sm:$0x3] %vm491_vm4, %v487_v47 }
  0x82   : > { %526 = vst.msk [vmem:[%s1172_s14] sm:$0x3] %vm491_vm4, %v524_v48 }
  0x83   : > { %897 = shalt.err (!%p894_p5)
}
  0x84   : > { %s898_s27 = scalar_lea.hbm %s1170_s30, 32  ;;  %s902_s12 = scalar_lea.hbm %s1241_s3, 64 }
  0x85   : > { %p899_p6 = scmp.ne.s32.totalorder %s1170_s30, %s898_s27  ;;  %p903_p4 = scmp.lt.s32.totalorder %s1170_s30, %s1241_s3 }
  0x86   : > { %p904_p13 = scmp.lt.s32.totalorder %s902_s12, %s898_s27 }
  0x87   : > { %p900_p7 = pnand %p899_p6, %p1081_p9 }
  0x88   : > { %p905_p11 = por %p904_p13, %p903_p4 }
  0x89   : > { %p901_p10 = pneg %p900_p7 }
  0x8b   : > { %p906_p8 = pnand %p905_p11, %p901_p10 }
  0x8d   : > { %909 = shalt.err (!%p906_p8)
}
  0x8e   : > { %783 = dma.vmem_to_hbm [thread:$0]  (%p1081_p9), %s564_s9, 32, %s1170_s30, %s536_s15  }
  0x8f   : > { %s1252_s16 = sshll.u32 %s986_s21, 5  ;;  %s579_s11 = sshll.u32 %s1172_s14, 4  ;;  %s580_s11 = int_to_ptr.vmem [resolvable:$true] %s579_s11 }
  0x90   : > { %s577_s10 = scalar_lea.hbm %s1242_s4, %s1252_s16  ;;  %s541_s29 = scalar_lea.sflag [#allocation7], %s1116_s28 }
  0x91   : > { %s910_s27 = scalar_lea.vmem %s580_s11, 32  ;;  %s999_s12 = smov [#allocation6]  }
  0x92   : > { %p911_p12 = scmp.ne.s32.totalorder %s580_s11, %s910_s27  ;;  %s914_s17 = sshll.u32 %s999_s12, 4  ;;  %s915_s17 = int_to_ptr.vmem [resolvable:$false] %s914_s17 }
  0x93   : > { %s916_s0 = scalar_lea.vmem %s915_s17, 64  ;;  %p917_p2 = scmp.lt.s32.totalorder %s580_s11, %s915_s17 }
  0x94   : > { %p912_p0 = pnand %p911_p12, %p1081_p9  ;;  %p918_p3 = scmp.lt.s32.totalorder %s916_s0, %s910_s27 }
  0x96   : > { %p913_p1 = pneg %p912_p0  ;;  %p919_p5 = por %p918_p3, %p917_p2 }
  0x98   : > { %p920_p6 = pnand %p919_p5, %p913_p1 }
  0x9a   : > { %923 = shalt.err (!%p920_p6)
}
  0x9b   : > { %s924_s21 = scalar_lea.hbm %s577_s10, 32  ;;  %s928_s30 = scalar_lea.hbm %s1242_s4, 64 }
  0x9c   : > { %p925_p7 = scmp.ne.s32.totalorder %s577_s10, %s924_s21  ;;  %p929_p13 = scmp.lt.s32.totalorder %s577_s10, %s1242_s4 }
  0x9d   : > { %p930_p11 = scmp.lt.s32.totalorder %s928_s30, %s924_s21 }
  0x9e   : > { %p926_p10 = pnand %p925_p7, %p1081_p9 }
  0x9f   : > { %p931_p8 = por %p930_p11, %p929_p13 }
  0xa0   : > { %p927_p4 = pneg %p926_p10 }
  0xa2   : > { %p932_p12 = pnand %p931_p8, %p927_p4 }
  0xa4   : > { %935 = shalt.err (!%p932_p12)
}
  0xa5   : > { %784 = dma.vmem_to_hbm [thread:$0]  (%p1081_p9), %s580_s11, 32, %s577_s10, %s541_s29   ;;  %vm533_vm5 = vcmask 0  }
  0xa6   : > { %s356_s24 = scalar_lea.vmem %s1243_s5, %s1128_s13 }
 0x108   : > { %v532_v15 = vpop.xlane.xlu0 %531 }
 0x109   : > { %534 = vst.msk [vmem:[%s356_s24] sm:$0x1] %vm533_vm5, %v532_v15 }
 0x10a PF: > { %s594_s25 = sand.u32 1, %s974_s18   ;;  %p1253_p0 = scmp.ne.s32.totalorder %s1249_s8, 0 }
 0x10b   : > { %p1254_p1 = scmp.ge.s32.totalorder %s994_s23, 2  ;;  %s595_s27 = scalar_lea.sflag [#allocation4], %s594_s25 }
 0x10d   : > { %p792_p2 = pnand %p1254_p1, %p1253_p0 }
 0x10f   : > { %p793_p3 = pneg %p792_p2 }
 0x111   : > { %965 = dma.done.wait (%p793_p3), %s595_s27, 32  }
 0x112   : > { %967 = vsyncadd (%p793_p3), %s595_s27, 4294967264  ;;  %s604_s6 = scalar_lea.sflag [#allocation7], %s594_s25 }
 0x113   : > { %969 = dma.done.wait (%p793_p3), %s604_s6, 32  }
 0x114   : > { %971 = vsyncadd (%p793_p3), %s604_s6, 4294967264  ;;  %s25_s23 = sadd.s32 1, %s994_s23   ;;  %s1255_s18 = smov %s978_s19 }
 0x115   : > { %p22_p9 = scmp.ge.s32.totalorder %s25_s23, 4   ;;  %s1256_s19 = smov %s982_s20 }
 0x116   : > { %s1257_s20 = smov %s1086_s7  ;;  %s1258_s21 = smov %s990_s22 }
 0x117   : > { %s1259_s22 = smov %s1261_s26  ;;  %24 = sbr.rel (!%p22_p9) target bundleno = 10 (0xa), region = 112 }
 0x11c   :  { %618 = vsyncpa [#allocation3], 1 }
 0x11d   :  { %620 = vsyncpa [#allocation3 + $0x1], 1 }
 0x11e   :  { %621 = vsyncpa [#allocation4], 1 }
 0x11f   :  { %623 = vsyncpa [#allocation4 + $0x1], 1 }
 0x120   :  { %624 = vsyncpa [#allocation7], 1 }
 0x121   :  { %626 = vsyncpa [#allocation7 + $0x1], 1 }

</bundles_post_ra>
